<compile_context>
chip_gen: v5e
topology: v5e:2x2
jax: 0.10.0
libtpu: 0.0.40
codegen_flags: <defaults>
</compile_context>

<pallas_src>
import functools
import math

import jax
import jax.numpy as jnp
from jax.experimental import pallas as pl
from jax.experimental.pallas import tpu as pltpu


def _round_up(x: int, m: int) -> int:
    return ((x + m - 1) // m) * m


def _make_positional_encoding(embed_size: int, block_size: int) -> jnp.ndarray:
    """Replicates the PyTorch double-loop sinusoidal PE exactly (float32)."""
    pos = jnp.arange(block_size, dtype=jnp.float32)[:, None]          # (block, 1)
    i = jnp.arange(0, embed_size, 2, dtype=jnp.float32)[None, :]      # (1, E/2)
    angle = pos / (10000.0 ** (i / embed_size))                       # (block, E/2)
    pe = jnp.zeros((block_size, embed_size), dtype=jnp.float32)
    pe = pe.at[:, 0::2].set(jnp.sin(angle))
    pe = pe.at[:, 1::2].set(jnp.cos(angle))
    return pe


def _embedding_kernel(ids_ref, pe_ref, emb_hbm, out_ref, rows, sem, *,
                      vocab_size: int, tile_t: int):
    """One (batch, seq-tile) step.

    ids_ref : SMEM (B, T_pad) int32     -- scalar-prefetched token ids
    pe_ref  : VMEM (TILE_T, E) float32  -- positional encodings for this tile
    emb_hbm : ANY  (V, E)     float32   -- embedding table, left in HBM
    out_ref : VMEM (1, TILE_T, E)       -- output tile
    rows    : VMEM (TILE_T, E) float32  -- DMA-gather landing buffer
    sem     : DMA semaphore (shared by all row copies of this tile)
    """
    b = pl.program_id(0)
    t = pl.program_id(1)
    base = t * tile_t

    # Issue one row DMA per token in this tile (HBM -> VMEM gather).
    @pl.loop(0, tile_t)
    def _start(j):
        # TODO(synk): PyTorch nn.Embedding raises on out-of-range ids; we clamp.
        tok = jnp.clip(ids_ref[b, base + j], 0, vocab_size - 1)
        pltpu.make_async_copy(emb_hbm.at[tok], rows.at[j], sem).start()

    # Wait for all row DMAs of this tile (same-size descriptors, shared sem).
    @pl.loop(0, tile_t)
    def _wait(j):
        pltpu.make_async_copy(emb_hbm.at[0], rows.at[j], sem).wait()

    # Single vectorized add + store for the whole tile.
    # TODO(synk): for deployed E < 128 fold 128/E tokens per row (lane-dense
    # out_spec) to avoid masked vst.msk partial stores; irrelevant for E >= 128.
    out_ref[0] = rows[...] + pe_ref[...]


def embedding_layer(token_ids: jnp.ndarray,
                    emb_table: jnp.ndarray,
                    pe_full: jnp.ndarray) -> jnp.ndarray:
    """Pallas equivalent of EmbeddingLayer.forward.

    token_ids: (B, T) int32
    emb_table: (V, E) float32
    pe_full  : (block_size, E) float32, with T <= block_size
    returns  : (B, T, E) float32
    """
    B, T = token_ids.shape
    V, E = emb_table.shape

    # Sequence tiling: large tiles amortize the ~0.35 us per-grid-step cost,
    # capped so the number of in-flight row DMAs per step stays modest.
    TILE_T = min(256, _round_up(T, 8))
    T_pad = _round_up(T, TILE_T)
    T_tiles = T_pad // TILE_T

    ids = token_ids.astype(jnp.int32)
    if T_pad != T:
        ids = jnp.pad(ids, ((0, 0), (0, T_pad - T)))           # pad tokens -> id 0

    pe = pe_full[:T, :].astype(jnp.float32)
    if T_pad != T:
        pe = jnp.pad(pe, ((0, T_pad - T), (0, 0)))

    grid = (B, T_tiles)

    grid_spec = pltpu.PrefetchScalarGridSpec(
        num_scalar_prefetch=1,                                   # ids -> SMEM
        grid=grid,
        in_specs=[
            # Positional encodings indexed by sequence position only (no B tile).
            pl.BlockSpec((TILE_T, E), lambda b, t, ids_ref: (t, 0)),
            # Embedding table stays in HBM; gathered row-by-row via DMA.
            pl.BlockSpec(memory_space=pl.ANY),
        ],
        out_specs=pl.BlockSpec((1, TILE_T, E), lambda b, t, ids_ref: (b, t, 0)),
        scratch_shapes=[
            pltpu.VMEM((TILE_T, E), jnp.float32),                # gather buffer
            pltpu.SemaphoreType.DMA,                             # row-copy sem
        ],
    )

    # Explicit VMEM budget: 2x(pe) + 2x(out) double-buffered tiles + gather
    # scratch, with generous headroom (table is not VMEM-resident anymore).
    tile_bytes = TILE_T * E * 4
    vmem_limit = max(16 * 1024 * 1024, 6 * tile_bytes)

    out = pl.pallas_call(
        functools.partial(_embedding_kernel, vocab_size=V, tile_t=TILE_T),
        out_shape=jax.ShapeDtypeStruct((B, T_pad, E), jnp.float32),
        grid_spec=grid_spec,
        compiler_params=pltpu.CompilerParams(
            dimension_semantics=("parallel", "parallel"),        # 2-TC shardable
            vmem_limit_bytes=vmem_limit),
    )(ids, pe, emb_table.astype(jnp.float32))

    return out[:, :T, :]


if __name__ == "__main__":
    # Small, deterministic configuration consistent with the module.
    vocab_size = 50
    embed_size = 32
    block_size = 16
    batch = 2
    seq_len = 8            # x.size(1) <= block_size

    key = jax.random.PRNGKey(0)
    k_emb, k_ids = jax.random.split(key)

    # nn.Embedding default init: N(0, 1)
    emb_table = jax.random.normal(k_emb, (vocab_size, embed_size),
                                  dtype=jnp.float32)
    pe_full = _make_positional_encoding(embed_size, block_size)

    token_ids = jax.random.randint(k_ids, (batch, seq_len), 0, vocab_size,
                                   dtype=jnp.int32)

    out = embedding_layer(token_ids, emb_table, pe_full)
    out = jax.block_until_ready(out)

    # Pure-JAX reference check (gather + broadcast add); gather path is exact.
    ref = emb_table[token_ids] + pe_full[:seq_len, :][None, :, :]
    assert out.shape == (batch, seq_len, embed_size)
    assert jnp.allclose(out, ref, atol=1e-6), "mismatch vs reference"

    print("KERNEL_OK")
</pallas_src>

<mosaic_0001>
module attributes {stable_mosaic.version = 11 : i64} {
  func.func @_embedding_kernel(%arg0: i32, %arg1: i32, %arg2: memref<2x8xi32, #tpu.memory_space<smem>>, %arg3: memref<8x32xf32, #tpu.memory_space<vmem>>, %arg4: memref<50x32xf32, #tpu.memory_space<any>>, %arg5: memref<1x8x32xf32, #tpu.memory_space<vmem>>, %arg6: memref<8x32xf32, #tpu.memory_space<vmem>>, %arg7: memref<!tpu.dma_semaphore, #tpu.memory_space<semaphore_mem>>) attributes {dimension_semantics = [#tpu.dimension_semantics<parallel>, #tpu.dimension_semantics<parallel>], iteration_bounds = array<i64: 2, 1>, scalar_prefetch = 1 : i64, scratch_operands = 2 : i64, tpu.core_type = #tpu.core_type<tc>, window_params = [{transform_indices = @transform_0, window_bounds = array<i64: 8, 32>}, {}, {transform_indices = @transform_2, window_bounds = array<i64: 1, 8, 32>}]} {
    %c8_i32 = arith.constant 8 : i32
    %0 = arith.muli %arg1, %c8_i32 : i32
    %c0_i32 = arith.constant 0 : i32
    %c8_i32_0 = arith.constant 8 : i32
    %1 = arith.addi %c0_i32, %c8_i32_0 : i32
    %c1_i32 = arith.constant 1 : i32
    scf.for %arg8 = %c0_i32 to %1 step %c1_i32  : i32 {
      %c1_i32_12 = arith.constant 1 : i32
      %9 = arith.muli %arg8, %c1_i32_12 : i32
      %c0_i32_13 = arith.constant 0 : i32
      %10 = arith.addi %c0_i32_13, %9 : i32
      %11 = arith.addi %0, %10 : i32
      %12 = arith.index_cast %arg0 : i32 to index
      %13 = arith.index_cast %11 : i32 to index
      %14 = memref.load %arg2[%12, %13] : memref<2x8xi32, #tpu.memory_space<smem>>
      %c0_i32_14 = arith.constant 0 : i32
      %c49_i32 = arith.constant 49 : i32
      %15 = arith.maxsi %c0_i32_14, %14 : i32
      %16 = arith.minsi %c49_i32, %15 : i32
      %c0_i32_15 = arith.constant 0 : i32
      %17 = tpu.memref_slice %arg4[%16, %c0_i32_15] : memref<50x32xf32, #tpu.memory_space<any>> -> memref<1x32xf32, #tpu.memory_space<any>>
      %18 = tpu.memref_squeeze %17 : memref<1x32xf32, #tpu.memory_space<any>> -> memref<32xf32, #tpu.memory_space<any>>
      %c0_i32_16 = arith.constant 0 : i32
      %19 = tpu.memref_slice %arg6[%10, %c0_i32_16] : memref<8x32xf32, #tpu.memory_space<vmem>> -> memref<1x32xf32, #tpu.memory_space<vmem>>
      %20 = tpu.memref_squeeze %19 : memref<1x32xf32, #tpu.memory_space<vmem>> -> memref<32xf32, #tpu.memory_space<vmem>>
      tpu.enqueue_dma source(%18 : memref<32xf32, #tpu.memory_space<any>>) target(%20 : memref<32xf32, #tpu.memory_space<vmem>>) target_semaphore(%arg7 : memref<!tpu.dma_semaphore, #tpu.memory_space<semaphore_mem>>)
    }
    %c8_i32_1 = arith.constant 8 : i32
    %c0_i32_2 = arith.constant 0 : i32
    %c8_i32_3 = arith.constant 8 : i32
    %2 = arith.addi %c0_i32_2, %c8_i32_3 : i32
    %c1_i32_4 = arith.constant 1 : i32
    scf.for %arg8 = %c0_i32_2 to %2 step %c1_i32_4  : i32 {
      %c1_i32_12 = arith.constant 1 : i32
      %9 = arith.muli %arg8, %c1_i32_12 : i32
      %c0_i32_13 = arith.constant 0 : i32
      %10 = arith.addi %c0_i32_13, %9 : i32
      %c0_i32_14 = arith.constant 0 : i32
      %c0_i32_15 = arith.constant 0 : i32
      %11 = tpu.memref_slice %arg4[%c0_i32_14, %c0_i32_15] : memref<50x32xf32, #tpu.memory_space<any>> -> memref<1x32xf32, #tpu.memory_space<any>>
      %12 = tpu.memref_squeeze %11 : memref<1x32xf32, #tpu.memory_space<any>> -> memref<32xf32, #tpu.memory_space<any>>
      %c0_i32_16 = arith.constant 0 : i32
      %13 = tpu.memref_slice %arg6[%10, %c0_i32_16] : memref<8x32xf32, #tpu.memory_space<vmem>> -> memref<1x32xf32, #tpu.memory_space<vmem>>
      %14 = tpu.memref_squeeze %13 : memref<1x32xf32, #tpu.memory_space<vmem>> -> memref<32xf32, #tpu.memory_space<vmem>>
      tpu.wait_dma2 semaphore(%arg7 : memref<!tpu.dma_semaphore, #tpu.memory_space<semaphore_mem>>) src(%12 : memref<32xf32, #tpu.memory_space<any>>) dst(%14 : memref<32xf32, #tpu.memory_space<vmem>>)
    }
    %c8_i32_5 = arith.constant 8 : i32
    %c0 = arith.constant 0 : index
    %c0_6 = arith.constant 0 : index
    %3 = vector.load %arg6[%c0, %c0_6] : memref<8x32xf32, #tpu.memory_space<vmem>>, vector<8x32xf32>
    %c0_7 = arith.constant 0 : index
    %c0_8 = arith.constant 0 : index
    %4 = vector.load %arg3[%c0_7, %c0_8] : memref<8x32xf32, #tpu.memory_space<vmem>>, vector<8x32xf32>
    %5 = arith.addf %3, %4 : vector<8x32xf32>
    %c0_9 = arith.constant 0 : index
    %c0_10 = arith.constant 0 : index
    %c0_11 = arith.constant 0 : index
    %6 = vector.load %arg5[%c0_9, %c0_10, %c0_11] : memref<1x8x32xf32, #tpu.memory_space<vmem>>, vector<1x8x32xf32>
    %7 = vector.shape_cast %6 : vector<1x8x32xf32> to vector<8x32xf32>
    %8 = vector.shape_cast %5 : vector<8x32xf32> to vector<1x8x32xf32>
    tpu.vector_store %arg5[%c0_9, %c0_10, %c0_11], %8 {strides = array<i32>} : memref<1x8x32xf32, #tpu.memory_space<vmem>>, vector<1x8x32xf32>,
    return
  }
  func.func @transform_0(%arg0: i32, %arg1: i32, %arg2: memref<2x8xi32, #tpu.memory_space<smem>>) -> (i32, i32) {
    %c0_i32 = arith.constant 0 : i32
    %c0_i32_0 = arith.constant 0 : i32
    return %arg1, %c0_i32 : i32, i32
  }
  func.func @transform_2(%arg0: i32, %arg1: i32, %arg2: memref<2x8xi32, #tpu.memory_space<smem>>) -> (i32, i32, i32) {
    %c0_i32 = arith.constant 0 : i32
    %c0_i32_0 = arith.constant 0 : i32
    return %arg0, %arg1, %c0_i32 : i32, i32, i32
  }
}

</mosaic_0001>

<bundles_post_ra>
// kernel: tpu_custom_call.1
= control target key start
LH: loop header
LB: loop body
LE: loop exit
PB: predicated region body
PF: predicated region fallthrough
CT: control target
= control target key end

     0   :  { %s518_s15 = smov [#allocation5]   ;;  %s652_s0 = inlined_call_operand.vmem [shape: s32[2,8], index: 0, kind: input, shape index: {}]   ;;  %s653_s1 = inlined_call_operand.vmem [shape: f32[8,32], index: 1, kind: input, shape index: {}]   ;;  %s654_s2 = inlined_call_operand.vmem [shape: f32[50,32], index: 2, kind: input, shape index: {}]   ;;  %s655_s3 = inlined_call_operand.hbm [shape: f32[2,8,32], index: 3, kind: output, shape index: {}]  }
   0x1   :  { %s9_s14 = sshll.u32 %s652_s0, 4  ;;  %s10_s14 = int_to_ptr.vmem [resolvable:$true] %s9_s14 }
   0x2   :  { %12 = dma.vmem_to_smem %s10_s14, 32, %s518_s15, [#allocation4] }
   0x3   :  { %478 = dma.done.wait [#allocation4], 32 }
   0x4   :  { %479 = vsyncadd [#allocation4], 4294967264 }
   0x5   :  { %15 = sfence }
   0x6   :  { %16 = vsyncpa [#allocation7], 0 }
   0x7   :  { %18 = vsyncpa [#allocation7 + $0x1], 0  ;;  %s542_s16 = smov 0   ;;  %s544_s17 = smov 0  }
   0x8   :  { %s546_s18 = smov 0   ;;  %s548_s19 = smov 0  }
   0x9   :  { %s550_s20 = smov 0   ;;  %s552_s21 = smov 0  }
   0xa LB: > { %s315_s0 = sadd.s32 4294967295, %s508_s21   ;;  %s316_s22 = sadd.s32 4294967294, %s508_s21   ;;  %s508_s21 = sphi %s552_s21, %s24_s21   ;;  %s504_s20 = sphi %s550_s20, %s662_s20   ;;  %s500_s19 = sphi %s548_s19, %s661_s19   ;;  %s496_s18 = sphi %s546_s18, %s660_s18   ;;  %s492_s17 = sphi %s544_s17, %s659_s17   ;;  %s488_s16 = sphi %s542_s16, %s658_s16  }
   0xb   : > { %s36_s23 = sadd.s32 1, %s504_s20  ;;  %s71_s24 = sadd.s32 1, %s496_s18 }
   0xc   : > { %p38_p0 = scmp.ge.s32.totalorder %s36_s23, 2  ;;  %p81_p1 = scmp.ne.s32.totalorder %s496_s18, %s492_s17 }
   0xd   : > { %p82_p2 = scmp.eq.s32.totalorder %s315_s0, 1  ;;  %p87_p3 = scmp.ne.s32.totalorder %s492_s17, %s488_s16 }
   0xe   : > { %s664_s23 = smov (%p38_p0, %s36_s23), 0  ;;  %p88_p5 = scmp.eq.s32.totalorder %s316_s22, 1 }
   0xf   : > { %p582_p4 = por %p82_p2, %p81_p1  ;;  %s66_s26 = ssub.s32 %s504_s20, %s664_s23 }
  0x10   : > { %p319_p6 = scmp.ge.s32.totalorder %s508_s21, 1  ;;  %p69_p7 = scmp.eq.s32.totalorder %s66_s26, 0 }
  0x11   : > { %p589_p8 = por %p88_p5, %p87_p3  ;;  %p113_p9 = scmp.lt.s32.totalorder %s508_s21, 3 }
  0x12   : > { %s595_s28 = scalar_select %p69_p7, %s496_s18, %s71_s24  }
  0x13   : > { %p114_p10 = pnand %p319_p6, %p113_p9 }
  0x14   : > { %s129_s29 = sand.u32 (!%p114_p10), 1, %s492_s17   ;;  %s510_s5 = smov (!%p114_p10), 0  }
  0x15   : > { %117 = sbr.rel (%p114_p10) target bundleno = 69 (0x45), region = 24  ;;  %s600_s30 = sshll.u32 (!%p114_p10), %s129_s29, 3 }
  0x16   : > { %s131_s4 = scalar_lea.vmem (!%p114_p10), [#allocation6], %s600_s30 }
  0x1a LB: >> { %s144_s6 = sshra.s32 %s512_s5, 7  ;;  %s149_s7 = sand.u32 127, %s512_s5  ;;  %s512_s5 = sphi %s510_s5, %s142_s5  }
  0x1b   : >> { %s146_s8 = sadd.s32 %s500_s19, %s144_s6  ;;  %s157_s15 = scalar_lea.vmem [#allocation2], %s512_s5 }
  0x1c   : >> { %s321_s9 = sshll.u32 %s146_s8, 7 }
  0x1d   : >> { %s150_s10 = sadd.s32 %s321_s9, %s149_s7 }
  0x1e   : >> { %s151_s11 = sld [smem:[#allocation5 + %s150_s10]] }
  0x24   : >> { %p152_p11 = scmp.gt.s32.totalorder %s151_s11, 0  ;;  %p322_p12 = scmp.lt.s32.totalorder %s151_s11, 49 }
  0x26   : >> { %s666_s11 = smov (!%p152_p11, %s151_s11), 0 }
  0x27   : >> { %s668_s11 = smov (!%p322_p12, %s666_s11), 49 }
  0x28   : >> { %s156_s14 = scalar_lea.vmem %s654_s2, %s668_s11 }
  0x29   : >> { %v172_v0 = vld [vmem:[%s156_s14] sm:$0x1] }
  0x2a   : >> { %173 = vst [vmem:[%s157_s15] sm:$0x1] %v172_v0 }
  0x2b   : >> { %191 = vsyncadd [#allocation3], 16  ;;  %s142_s5 = sadd.s32 1, %s512_s5  }
  0x2c   : >> { %p139_p13 = scmp.ge.s32.totalorder %s142_s5, 8  }
  0x2d   : > { %s514_s0 = smov (%p139_p13), 0  }
  0x2e   : > { %141 = sbr.rel (!%p139_p13) target bundleno = 26 (0x1a), region = 109 }
  0x33 LB: >> { %480 = dma.done.wait [#allocation3], 16  ;;  %s516_s0 = sphi %s514_s0, %s197_s0  }
  0x34   : >> { %481 = vsyncadd [#allocation3], 4294967280  ;;  %s197_s0 = sadd.s32 1, %s516_s0  }
  0x35   : >> { %p194_p0 = scmp.ge.s32.totalorder %s197_s0, 8  }
  0x36   : > { %v200_v1 = vld [vmem:[#allocation2] sm:$0xff] (%p194_p0)  ;;  %vm203_vm0 = vcmask (%p194_p0), 261120   ;;  %s328_s26 = sshll.u32 (%p194_p0), %s500_s19, 3  ;;  %s219_s8 = sshll.u32 (%p194_p0), %s131_s4, 4  ;;  %s220_s8 = int_to_ptr.vmem [resolvable:$true] %s219_s8 }
  0x37   : > { %196 = sbr.rel (!%p194_p0) target bundleno = 51 (0x33), region = 120  ;;  %v201_v2 = vld [vmem:[%s653_s1] sm:$0xff] (%p194_p0)  ;;  %s217_s7 = scalar_lea.hbm (%p194_p0), %s655_s3, %s328_s26 }
  0x38   : > { %v202_v3 = vadd.f32 (%p194_p0), %v201_v2, %v200_v1  ;;  %s221_s9 = sshll.u32 (%p194_p0), %s217_s7, 4  ;;  %s206_s10 = scalar_lea.sflag (%p194_p0), [#allocation7], %s129_s29  ;;  %s222_s9 = int_to_ptr.hbm [resolvable:$true] %s221_s9 }
  0x39   : > { %s432_s11 = sshra.s32 (%p194_p0), %s222_s9, 4  ;;  %s438_s14 = scalar_lea.hbm (%p194_p0), %s655_s3, 16  ;;  %s433_s11 = int_to_ptr.hbm [resolvable:$true] %s432_s11 }
  0x3a   : > { %204 = vst.msk [vmem:[%s131_s4] sm:$0xff] (%p194_p0), %vm203_vm0, %v202_v3  ;;  %s434_s12 = scalar_lea.hbm (%p194_p0), %s433_s11, 8  ;;  %p439_p5 = scmp.lt.s32.totalorder (%p194_p0), %s433_s11, %s655_s3 }
  0x3b   : > { %p435_p1 = scmp.ne.s32.totalorder (%p194_p0), %s433_s11, %s434_s12  ;;  %p440_p6 = scmp.lt.s32.totalorder (%p194_p0), %s438_s14, %s434_s12 }
  0x3d   : > { %p436_p2 = pnand %p435_p1, %p582_p4  ;;  %p441_p7 = por %p440_p6, %p439_p5 }
  0x3f   : > { %p437_p3 = pneg %p436_p2 }
  0x41   : > { %p442_p9 = pnand %p441_p7, %p437_p3 }
  0x43   : > { %445 = shalt.err (!%p442_p9)
}
  0x44   : > { %334 = dma.vmem_to_hbm [thread:$0]  (%p582_p4), %s220_s8, 128, %s222_s9, %s206_s10  }
  0x45 PF: > { %p340_p10 = scmp.ge.s32.totalorder %s508_s21, 2  ;;  %s233_s29 = sand.u32 1, %s488_s16  }
  0x46   : > { %s234_s30 = scalar_lea.sflag [#allocation7], %s233_s29 }
  0x47   : > { %p337_p11 = pnand %p340_p10, %p589_p8 }
  0x49   : > { %p338_p12 = pneg %p337_p11 }
  0x4b   : > { %483 = dma.done.wait (%p338_p12), %s234_s30, 128  }
  0x4c   : > { %485 = vsyncadd (%p338_p12), %s234_s30, 4294967168  ;;  %s24_s21 = sadd.s32 1, %s508_s21   ;;  %s658_s16 = smov %s492_s17 }
  0x4d   : > { %p21_p13 = scmp.ge.s32.totalorder %s24_s21, 4   ;;  %s659_s17 = smov %s496_s18 }
  0x4e   : > { %s660_s18 = smov %s595_s28  ;;  %s661_s19 = smov %s504_s20 }
  0x4f   : > { %s662_s20 = smov %s664_s23  ;;  %23 = sbr.rel (!%p21_p13) target bundleno = 10 (0xa), region = 131 }
  0x54   :  { %240 = vsyncpa [#allocation7], 1 }
  0x55   :  { %242 = vsyncpa [#allocation7 + $0x1], 1 }
  0x56   :  { %243 = vsyncmov [#allocation3] }
  0x59   :  { %s244_s25 = vpop.sfrf %243 }
  0x5a   :  { %p331_p4 = scmp.ne.s32.totalorder %s244_s25, 0 }
  0x5c   :  { %248 = shalt.err (%p331_p4)  }

</bundles_post_ra>
